<compile_context>
chip_gen: v7x
topology: tpu7x:2x2x1
jax: 0.10.0
libtpu: 0.0.40
codegen_flags: <defaults>
</compile_context>

<pallas_src>
import jax
import jax.numpy as jnp
from jax.experimental import pallas as pl
from jax.experimental.pallas import tpu as pltpu


def _round_up(x, m):
    return ((x + m - 1) // m) * m


def corda_adapter2_kernel(x_ref, beff_ref, at_ref, wres_ref, bias_ref,
                          o_ref, y_ref, acc_ref):
    """One (tm, tn) output tile of out = (x @ B_eff) @ A_T + x @ Wres_T + bias."""
    # The rank-r projection path depends only on the row block i, not on the
    # d_out tile j: compute it once (at j == 0) and reuse it for all j.
    @pl.when(pl.program_id(1) == 0)
    def _():
        y = jnp.dot(x_ref[...], beff_ref[...],
                    preferred_element_type=jnp.float32)          # (tm, r) f32
        y_ref[...] = y.astype(y_ref.dtype)                       # bf16 for the MXU

    # f32 accumulation in VMEM scratch bounds the epilogue's live vregs.
    acc_ref[...] = jnp.dot(x_ref[...], wres_ref[...],
                           preferred_element_type=jnp.float32)   # (tm, tn)
    acc_ref[...] += jnp.dot(y_ref[...], at_ref[...],
                            preferred_element_type=jnp.float32)  # (tm, tn)
    o_ref[...] = (acc_ref[...] + bias_ref[...]).astype(o_ref.dtype)


def fuse_corda_adapter2_weights(adapter_U, adapter_S, adapter_V, adapter_U2,
                                weight_residual, bias=None, sigma_fuse='UV',
                                compute_dtype=jnp.bfloat16, lane=128):
    """Replicates CorDA_adapter2.__init__ weight fusion.

    Folds the (I - U2 U2^T) projection in float32, pre-transposes everything
    for plain x @ W kernels, and pads d_out to a lane-dense multiple of 128
    ONCE here so the per-call forward never re-touches the residual weight.
    """
    U = jnp.asarray(adapter_U, jnp.float32)            # (d_out, r)
    S = jnp.asarray(adapter_S, jnp.float32)            # (r,)
    V = jnp.asarray(adapter_V, jnp.float32)            # (d_in, r)
    U2 = jnp.asarray(adapter_U2, jnp.float32)          # (d_in, r2)
    W_res = jnp.asarray(weight_residual, jnp.float32)  # (d_out, d_in)

    if sigma_fuse == 'UV':
        s = jnp.sqrt(S)
        A_w = U * s[None, :]
        B_w = V.T * s[:, None]
    elif sigma_fuse == 'U':
        A_w = U * S[None, :]
        B_w = V.T
    elif sigma_fuse == 'V':
        A_w = U
        B_w = V.T * S[:, None]
    else:
        raise ValueError(f"unknown sigma_fuse: {sigma_fuse}")

    # y = (x - (x @ U2) @ U2.T) @ B_w.T == x @ B_eff (cancellation kept in f32).
    # Note: the bf16 cast below reintroduces ~1e-3 relative leakage of the
    # removed U2 subspace; keep B_eff in f32 if an exact null space is required.
    BwT = B_w.T                                         # (d_in, r)
    B_eff = BwT - U2 @ (U2.T @ BwT)                     # (d_in, r)

    d_out = U.shape[0]
    Np = _round_up(d_out, lane)
    pad_n = Np - d_out

    A_T = A_w.T                                         # (r, d_out)
    Wres_T = W_res.T                                    # (d_in, d_out)
    bias_row = (jnp.zeros((d_out,), jnp.float32) if bias is None
                else jnp.asarray(bias, jnp.float32)).reshape(1, d_out)
    if pad_n:
        A_T = jnp.pad(A_T, ((0, 0), (0, pad_n)))
        Wres_T = jnp.pad(Wres_T, ((0, 0), (0, pad_n)))
        bias_row = jnp.pad(bias_row, ((0, 0), (0, pad_n)))

    return {
        "B_eff": B_eff.astype(compute_dtype),           # (d_in, r)
        "A_T": A_T.astype(compute_dtype),               # (r, Np)
        "Wres_T": Wres_T.astype(compute_dtype),         # (d_in, Np)
        "bias_row": bias_row,                           # (1, Np) f32
        "d_out": d_out,
    }


def _default_vmem_limit_bytes():
    # Generation-aware: v7x has 64 MiB physical VMEM per TensorCore -> leave
    # headroom; v5e/v6e have 128 MiB -> use most of it for larger tiles.
    try:
        cap = int(pltpu.get_tpu_info().vmem_capacity_bytes)
    except Exception:
        cap = 0
    if cap and cap <= 64 * 1024 * 1024:
        return 48 * 1024 * 1024
    return 96 * 1024 * 1024


def corda_adapter2_forward(inp, params, *, tm=512, tn=256,
                           compute_dtype=jnp.bfloat16,
                           vmem_limit_bytes=None):
    B_eff, A_T, Wres_T = params["B_eff"], params["A_T"], params["Wres_T"]
    bias_row, d_out = params["bias_row"], params["d_out"]

    *lead, d_in = inp.shape
    assert d_in == B_eff.shape[0], "d_in mismatch between input and fused weights"
    r = B_eff.shape[1]
    Np = Wres_T.shape[1]                 # lane-dense padded d_out (multiple of 128)
    out_dtype = inp.dtype

    x2d = jnp.reshape(inp, (-1, d_in)).astype(compute_dtype)
    M = x2d.shape[0]

    # Tile sizes: multiples of 128, clamped to the (padded) problem extents.
    tm_eff = min(_round_up(max(tm, 128), 128), _round_up(M, 128))
    tn_eff = tn if (tn <= Np and Np % tn == 0) else 128
    Mp = _round_up(M, tm_eff)

    x_p = jnp.pad(x2d, ((0, Mp - M), (0, 0))) if Mp != M else x2d

    if vmem_limit_bytes is None:
        vmem_limit_bytes = _default_vmem_limit_bytes()

    grid = (Mp // tm_eff, Np // tn_eff)

    out_p = pl.pallas_call(
        corda_adapter2_kernel,
        out_shape=jax.ShapeDtypeStruct((Mp, Np), out_dtype),
        grid_spec=pltpu.PrefetchScalarGridSpec(
            num_scalar_prefetch=0,
            grid=grid,
            in_specs=[
                pl.BlockSpec((tm_eff, d_in), lambda i, j: (i, 0)),    # x row block
                pl.BlockSpec((d_in, r), lambda i, j: (0, 0)),         # B_eff (grid-invariant)
                pl.BlockSpec((r, tn_eff), lambda i, j: (0, j)),       # A_w.T tile
                pl.BlockSpec((d_in, tn_eff), lambda i, j: (0, j)),    # W_res.T tile
                pl.BlockSpec((1, tn_eff), lambda i, j: (0, j)),       # bias tile
            ],
            out_specs=pl.BlockSpec((tm_eff, tn_eff), lambda i, j: (i, j)),
            scratch_shapes=[
                pltpu.VMEM((tm_eff, r), compute_dtype),               # y carry across j
                pltpu.VMEM((tm_eff, tn_eff), jnp.float32),            # f32 accumulator
            ],
        ),
        compiler_params=pltpu.CompilerParams(
            # i parallel (megacore splits on M), j arbitrary so the y scratch
            # computed at j == 0 is valid for all subsequent j of the same i.
            dimension_semantics=("parallel", "arbitrary"),
            vmem_limit_bytes=vmem_limit_bytes,
        ),
    )(x_p, B_eff, A_T, Wres_T, bias_row)

    out = out_p[:M, :d_out]
    return jnp.reshape(out, (*lead, d_out))


def corda_adapter2_reference(inp, adapter_U, adapter_S, adapter_V, adapter_U2,
                             weight_residual, bias=None, sigma_fuse='UV'):
    """Pure-JAX f32 replica of CorDA_adapter2.forward (the spec)."""
    U, S, V, U2 = adapter_U, adapter_S, adapter_V, adapter_U2
    if sigma_fuse == 'UV':
        s = jnp.sqrt(S)
        A_w = U * s[None, :]
        B_w = V.T * s[:, None]
    elif sigma_fuse == 'U':
        A_w = U * S[None, :]
        B_w = V.T
    else:
        A_w = U
        B_w = V.T * S[:, None]
    inp2 = inp - (inp @ U2) @ U2.T
    y = inp2 @ B_w.T
    out = y @ A_w.T + inp @ weight_residual.T
    if bias is not None:
        out = out + bias
    return out


if __name__ == "__main__":
    key = jax.random.PRNGKey(0)

    def make_case(k, B, S_seq, d_in, d_out, rank, r2):
        ks = jax.random.split(k, 7)
        inp = jax.random.normal(ks[0], (B, S_seq, d_in), jnp.float32)
        U = jax.random.normal(ks[1], (d_out, rank), jnp.float32) * 0.1
        S = jax.random.uniform(ks[2], (rank,), jnp.float32, minval=0.5, maxval=1.5)
        V = jax.random.normal(ks[3], (d_in, rank), jnp.float32) * 0.1
        U2 = jax.random.normal(ks[4], (d_in, r2), jnp.float32) * 0.1
        W_res = jax.random.normal(ks[5], (d_out, d_in), jnp.float32) * 0.05
        bias = jax.random.normal(ks[6], (d_out,), jnp.float32) * 0.5
        return inp, U, S, V, U2, W_res, bias

    k1, k2 = jax.random.split(key)

    # Case 1: module-scale toy shapes (batch=2, seq=8, d_in=32 -> d_out=48,
    # rank=8, r2=4), default (auto-clamped) tiles.
    inp, U, S, V, U2, W_res, bias = make_case(k1, 2, 8, 32, 48, 8, 4)
    params = fuse_corda_adapter2_weights(U, S, V, U2, W_res, bias, 'UV')
    out = corda_adapter2_forward(inp, params)
    jax.block_until_ready(out)
    ref = corda_adapter2_reference(inp, U, S, V, U2, W_res, bias, 'UV')
    assert out.shape == ref.shape
    assert jnp.allclose(out, ref, atol=3e-2, rtol=3e-2), "case 1 mismatch vs reference"

    # Case 2: multi-tile (2 x 3) grid exercising M / d_out padding, N tiling
    # and the cross-j reuse of the hoisted y = x @ B_eff scratch.
    inp, U, S, V, U2, W_res, bias = make_case(k2, 2, 72, 128, 320, 16, 8)
    params = fuse_corda_adapter2_weights(U, S, V, U2, W_res, bias, 'UV')
    out = corda_adapter2_forward(inp, params, tm=128, tn=128)
    jax.block_until_ready(out)
    ref = corda_adapter2_reference(inp, U, S, V, U2, W_res, bias, 'UV')
    assert jnp.allclose(out, ref, atol=3e-2, rtol=3e-2), "case 2 mismatch vs reference"

    print("KERNEL_OK")
</pallas_src>

<mosaic_0001>
module attributes {stable_mosaic.version = 11 : i64} {
  func.func @corda_adapter2_kernel(%arg0: i32, %arg1: i32, %arg2: memref<128x32xbf16, #tpu.memory_space<vmem>>, %arg3: memref<32x8xbf16, #tpu.memory_space<vmem>>, %arg4: memref<8x128xbf16, #tpu.memory_space<vmem>>, %arg5: memref<32x128xbf16, #tpu.memory_space<vmem>>, %arg6: memref<1x128xf32, #tpu.memory_space<vmem>>, %arg7: memref<128x128xf32, #tpu.memory_space<vmem>>, %arg8: memref<128x8xbf16, #tpu.memory_space<vmem>>, %arg9: memref<128x128xf32, #tpu.memory_space<vmem>>) attributes {dimension_semantics = [#tpu.dimension_semantics<parallel>, #tpu.dimension_semantics<arbitrary>], iteration_bounds = array<i64: 1, 1>, scalar_prefetch = 0 : i64, scratch_operands = 2 : i64, tpu.core_type = #tpu.core_type<tc>, window_params = [{transform_indices = @transform_0, window_bounds = array<i64: 128, 32>}, {pipeline_mode = #tpu.pipeline_mode<synchronous>, transform_indices = @transform_1, window_bounds = array<i64: 32, 8>}, {transform_indices = @transform_2, window_bounds = array<i64: 8, 128>}, {transform_indices = @transform_3, window_bounds = array<i64: 32, 128>}, {transform_indices = @transform_4, window_bounds = array<i64: 1, 128>}, {transform_indices = @transform_5, window_bounds = array<i64: 128, 128>}]} {
    %c0_i32 = arith.constant 0 : i32
    %0 = arith.cmpi eq, %arg1, %c0_i32 : i32
    %1 = arith.extui %0 : i1 to i32
    %c0_i32_0 = arith.constant 0 : i32
    %2 = arith.cmpi ne, %1, %c0_i32_0 : i32
    scf.if %2 {
      %c0_21 = arith.constant 0 : index
      %c0_22 = arith.constant 0 : index
      %18 = vector.load %arg2[%c0_21, %c0_22] : memref<128x32xbf16, #tpu.memory_space<vmem>>, vector<128x32xbf16>
      %c0_23 = arith.constant 0 : index
      %c0_24 = arith.constant 0 : index
      %19 = vector.load %arg3[%c0_23, %c0_24] : memref<32x8xbf16, #tpu.memory_space<vmem>>, vector<32x8xbf16>
      %cst_25 = arith.constant dense<0.000000e+00> : vector<128x8xf32>
      %20 = tpu.matmul %18, %19, %cst_25 {dimension_numbers = #tpu.dot_dimension_numbers<[1], [0], [0], [1], [0, 0, 1, 1], [], []>} : vector<128x32xbf16>, vector<32x8xbf16>, vector<128x8xf32> -> vector<128x8xf32>
      %21 = arith.truncf %20 : vector<128x8xf32> to vector<128x8xbf16>
      %c0_26 = arith.constant 0 : index
      %c0_27 = arith.constant 0 : index
      %22 = vector.load %arg8[%c0_26, %c0_27] : memref<128x8xbf16, #tpu.memory_space<vmem>>, vector<128x8xbf16>
      tpu.vector_store %arg8[%c0_26, %c0_27], %21 {strides = array<i32>} : memref<128x8xbf16, #tpu.memory_space<vmem>>, vector<128x8xbf16>,
    } else {
    }
    %c0 = arith.constant 0 : index
    %c0_1 = arith.constant 0 : index
    %3 = vector.load %arg2[%c0, %c0_1] : memref<128x32xbf16, #tpu.memory_space<vmem>>, vector<128x32xbf16>
    %c0_2 = arith.constant 0 : index
    %c0_3 = arith.constant 0 : index
    %4 = vector.load %arg5[%c0_2, %c0_3] : memref<32x128xbf16, #tpu.memory_space<vmem>>, vector<32x128xbf16>
    %cst = arith.constant dense<0.000000e+00> : vector<128x128xf32>
    %5 = tpu.matmul %3, %4, %cst {dimension_numbers = #tpu.dot_dimension_numbers<[1], [0], [0], [1], [0, 0, 1, 1], [], []>} : vector<128x32xbf16>, vector<32x128xbf16>, vector<128x128xf32> -> vector<128x128xf32>
    %c0_4 = arith.constant 0 : index
    %c0_5 = arith.constant 0 : index
    %6 = vector.load %arg9[%c0_4, %c0_5] : memref<128x128xf32, #tpu.memory_space<vmem>>, vector<128x128xf32>
    tpu.vector_store %arg9[%c0_4, %c0_5], %5 {strides = array<i32>} : memref<128x128xf32, #tpu.memory_space<vmem>>, vector<128x128xf32>,
    %c0_6 = arith.constant 0 : index
    %c0_7 = arith.constant 0 : index
    %7 = vector.load %arg9[%c0_6, %c0_7] : memref<128x128xf32, #tpu.memory_space<vmem>>, vector<128x128xf32>
    %c0_8 = arith.constant 0 : index
    %c0_9 = arith.constant 0 : index
    %8 = vector.load %arg8[%c0_8, %c0_9] : memref<128x8xbf16, #tpu.memory_space<vmem>>, vector<128x8xbf16>
    %c0_10 = arith.constant 0 : index
    %c0_11 = arith.constant 0 : index
    %9 = vector.load %arg4[%c0_10, %c0_11] : memref<8x128xbf16, #tpu.memory_space<vmem>>, vector<8x128xbf16>
    %cst_12 = arith.constant dense<0.000000e+00> : vector<128x128xf32>
    %10 = tpu.matmul %8, %9, %cst_12 {dimension_numbers = #tpu.dot_dimension_numbers<[1], [0], [0], [1], [0, 0, 1, 1], [], []>} : vector<128x8xbf16>, vector<8x128xbf16>, vector<128x128xf32> -> vector<128x128xf32>
    %11 = arith.addf %7, %10 : vector<128x128xf32>
    %c0_13 = arith.constant 0 : index
    %c0_14 = arith.constant 0 : index
    %12 = vector.load %arg9[%c0_13, %c0_14] : memref<128x128xf32, #tpu.memory_space<vmem>>, vector<128x128xf32>
    tpu.vector_store %arg9[%c0_13, %c0_14], %11 {strides = array<i32>} : memref<128x128xf32, #tpu.memory_space<vmem>>, vector<128x128xf32>,
    %c0_15 = arith.constant 0 : index
    %c0_16 = arith.constant 0 : index
    %13 = vector.load %arg9[%c0_15, %c0_16] : memref<128x128xf32, #tpu.memory_space<vmem>>, vector<128x128xf32>
    %c0_17 = arith.constant 0 : index
    %c0_18 = arith.constant 0 : index
    %14 = vector.load %arg6[%c0_17, %c0_18] : memref<1x128xf32, #tpu.memory_space<vmem>>, vector<1x128xf32>
    %15 = vector.broadcast %14 : vector<1x128xf32> to vector<128x128xf32>
    %16 = arith.addf %13, %15 : vector<128x128xf32>
    %c0_19 = arith.constant 0 : index
    %c0_20 = arith.constant 0 : index
    %17 = vector.load %arg7[%c0_19, %c0_20] : memref<128x128xf32, #tpu.memory_space<vmem>>, vector<128x128xf32>
    tpu.vector_store %arg7[%c0_19, %c0_20], %16 {strides = array<i32>} : memref<128x128xf32, #tpu.memory_space<vmem>>, vector<128x128xf32>,
    return
  }
  func.func @transform_0(%arg0: i32, %arg1: i32) -> (i32, i32) {
    %c0_i32 = arith.constant 0 : i32
    %c0_i32_0 = arith.constant 0 : i32
    return %arg0, %c0_i32 : i32, i32
  }
  func.func @transform_1(%arg0: i32, %arg1: i32) -> (i32, i32) {
    %c0_i32 = arith.constant 0 : i32
    %c0_i32_0 = arith.constant 0 : i32
    %c0_i32_1 = arith.constant 0 : i32
    return %c0_i32, %c0_i32_0 : i32, i32
  }
  func.func @transform_2(%arg0: i32, %arg1: i32) -> (i32, i32) {
    %c0_i32 = arith.constant 0 : i32
    %c0_i32_0 = arith.constant 0 : i32
    return %c0_i32, %arg1 : i32, i32
  }
  func.func @transform_3(%arg0: i32, %arg1: i32) -> (i32, i32) {
    %c0_i32 = arith.constant 0 : i32
    %c0_i32_0 = arith.constant 0 : i32
    return %c0_i32, %arg1 : i32, i32
  }
  func.func @transform_4(%arg0: i32, %arg1: i32) -> (i32, i32) {
    %c0_i32 = arith.constant 0 : i32
    %c0_i32_0 = arith.constant 0 : i32
    return %c0_i32, %arg1 : i32, i32
  }
  func.func @transform_5(%arg0: i32, %arg1: i32) -> (i32, i32) {
    %c0_i32 = arith.constant 0 : i32
    return %arg0, %arg1 : i32, i32
  }
}

</mosaic_0001>

<bundles_post_ra>
// kernel: tpu_custom_call.1
= control target key start
LH: loop header
LB: loop body
LE: loop exit
PB: predicated region body
PF: predicated region fallthrough
CT: control target
= control target key end

     0   :  { %10 = vsyncpa [#allocation5], 0  ;;  %s1251_s0 = inlined_call_operand.hbm [shape: bf16[128,32], index: 0, kind: input, shape index: {}]   ;;  %s1252_s1 = inlined_call_operand.hbm [shape: bf16[32,8], index: 1, kind: input, shape index: {}]   ;;  %s1253_s2 = inlined_call_operand.hbm [shape: bf16[8,128], index: 2, kind: input, shape index: {}]   ;;  %s1254_s3 = inlined_call_operand.hbm [shape: bf16[32,128], index: 3, kind: input, shape index: {}]   ;;  %s1255_s4 = inlined_call_operand.hbm [shape: f32[1,128], index: 4, kind: input, shape index: {}]   ;;  %s1256_s5 = inlined_call_operand.hbm [shape: f32[128,128], index: 5, kind: output, shape index: {}]  }
   0x1   :  { %11 = vsyncpa [#allocation8], 0 }
   0x2   :  { %12 = vsyncpa [#allocation11], 0 }
   0x3   :  { %13 = vsyncpa [#allocation6], 0  ;;  %s1091_s18 = smov [#allocation7]   ;;  %s1092_s20 = smov [#allocation10]  }
   0x4   :  { %s31_s19 = sshll.u32 %s1091_s18, 4  ;;  %s53_s21 = sshll.u32 %s1092_s20, 4  ;;  %s32_s19 = int_to_ptr.vmem [resolvable:$true] %s31_s19  ;;  %s1131_s21 = int_to_ptr.vmem [resolvable:$true] %s53_s21 }
   0x5   :  { %s951_s24 = scalar_lea.hbm %s1252_s1, 256 }
   0x6   :  { %p952_p0 = scmp.ne.s32.totalorder %s1252_s1, %s951_s24  ;;  %p955_p1 = scmp.lt.u32.totalorder %s951_s24, %s1252_s1 }
   0x8   :  { %p957_p2 = pnand %p955_p1, %p952_p0 }
   0xa   :  { %960 = shalt.err (!%p957_p2)
}
   0xb   :  { %s961_s29 = scalar_lea.vmem %s32_s19, 256  ;;  %p966_p4 = scmp.lt.s32.totalorder %s32_s19, %s32_s19 }
   0xc   :  { %p962_p3 = scmp.ne.s32.totalorder %s32_s19, %s961_s29  ;;  %p967_p5 = scmp.lt.s32.totalorder %s961_s29, %s961_s29 }
   0xe   :  { %p968_p6 = por %p967_p5, %p966_p4 }
  0x10   :  { %p969_p7 = pnand %p968_p6, %p962_p3 }
  0x12   :  { %972 = shalt.err (!%p969_p7)
}
  0x13   :  { %s1093_s30 = smov 64   ;;  %s1094_s6 = smov 4  }
  0x14   :  { %37 = dma.hbm_to_vmem [thread:$0]  %s1252_s1, 256, %s32_s19, [#allocation8], %s1093_s30, %s1093_s30, %s1094_s6  }
  0x15   :  { %s973_s11 = scalar_lea.hbm %s1254_s3, 256 }
  0x16   :  { %p974_p8 = scmp.ne.s32.totalorder %s1254_s3, %s973_s11  ;;  %p977_p9 = scmp.lt.u32.totalorder %s973_s11, %s1254_s3 }
  0x18   :  { %p979_p10 = pnand %p977_p9, %p974_p8 }
  0x1a   :  { %982 = shalt.err (!%p979_p10)
}
  0x1b   :  { %s983_s16 = scalar_lea.vmem %s1131_s21, 256  ;;  %p988_p12 = scmp.lt.s32.totalorder %s1131_s21, %s1131_s21 }
  0x1c   :  { %p984_p11 = scmp.ne.s32.totalorder %s1131_s21, %s983_s16  ;;  %p989_p13 = scmp.lt.s32.totalorder %s983_s16, %s983_s16 }
  0x1e   :  { %p990_p0 = por %p989_p13, %p988_p12 }
  0x20   :  { %p991_p1 = pnand %p990_p0, %p984_p11 }
  0x22   :  { %994 = shalt.err (!%p991_p1)
}
  0x23   :  { %59 = dma.hbm_to_vmem [thread:$0]  %s1254_s3, 256, %s1131_s21, [#allocation11], %s1093_s30, %s1093_s30, %s1094_s6  }
  0x24   :  { %s1095_s18 = smov [#allocation4]   ;;  %s1096_s20 = smov [#allocation9]  }
  0x25   :  { %s19_s19 = sshll.u32 %s1095_s18, 4  ;;  %s44_s22 = sshll.u32 %s1096_s20, 4  ;;  %s20_s19 = int_to_ptr.vmem [resolvable:$true] %s19_s19  ;;  %s45_s22 = int_to_ptr.vmem [resolvable:$true] %s44_s22 }
  0x26   :  { %s995_s25 = scalar_lea.hbm %s1251_s0, 1024 }
  0x27   :  { %p996_p2 = scmp.ne.s32.totalorder %s1251_s0, %s995_s25  ;;  %p999_p3 = scmp.lt.u32.totalorder %s995_s25, %s1251_s0 }
  0x29   :  { %p1001_p4 = pnand %p999_p3, %p996_p2 }
  0x2b   :  { %1004 = shalt.err (!%p1001_p4)
}
  0x2c   :  { %s1005_s3 = scalar_lea.vmem %s20_s19, 1024  ;;  %p1010_p6 = scmp.lt.s32.totalorder %s20_s19, %s20_s19 }
  0x2d   :  { %p1006_p5 = scmp.ne.s32.totalorder %s20_s19, %s1005_s3  ;;  %p1011_p7 = scmp.lt.s32.totalorder %s1005_s3, %s1005_s3 }
  0x2f   :  { %p1012_p8 = por %p1011_p7, %p1010_p6 }
  0x31   :  { %p1013_p9 = pnand %p1012_p8, %p1006_p5 }
  0x33   :  { %1016 = shalt.err (!%p1013_p9)
}
  0x34   :  { %25 = dma.hbm_to_vmem [thread:$0]  %s1251_s0, 1024, %s20_s19, [#allocation5], %s1093_s30, %s1093_s30, %s1094_s6  }
  0x35   :  { %s1017_s10 = scalar_lea.hbm %s1253_s2, 64 }
  0x36   :  { %p1018_p10 = scmp.ne.s32.totalorder %s1253_s2, %s1017_s10  ;;  %p1021_p11 = scmp.lt.u32.totalorder %s1017_s10, %s1253_s2 }
  0x38   :  { %p1023_p12 = pnand %p1021_p11, %p1018_p10 }
  0x3a   :  { %1026 = shalt.err (!%p1023_p12)
}
  0x3b   :  { %s1027_s15 = scalar_lea.vmem %s45_s22, 64  ;;  %p1032_p0 = scmp.lt.s32.totalorder %s45_s22, %s45_s22 }
  0x3c   :  { %p1028_p13 = scmp.ne.s32.totalorder %s45_s22, %s1027_s15  ;;  %p1033_p1 = scmp.lt.s32.totalorder %s1027_s15, %s1027_s15 }
  0x3e   :  { %p1034_p2 = por %p1033_p1, %p1032_p0 }
  0x40   :  { %p1035_p3 = pnand %p1034_p2, %p1028_p13 }
  0x42   :  { %1038 = shalt.err (!%p1035_p3)
}
  0x43   :  { %47 = dma.hbm_to_vmem [thread:$0]  %s1253_s2, 64, %s45_s22, [#allocation8]  }
  0x44   :  { %s1097_s6 = smov [#allocation12]   ;;  %s1039_s18 = scalar_lea.hbm %s1255_s4, 16 }
  0x45   :  { %s66_s16 = sshll.u32 %s1097_s6, 4  ;;  %p1040_p4 = scmp.ne.s32.totalorder %s1255_s4, %s1039_s18  ;;  %s67_s16 = int_to_ptr.vmem [resolvable:$true] %s66_s16 }
  0x46   :  { %p1043_p5 = scmp.lt.u32.totalorder %s1039_s18, %s1255_s4 }
  0x48   :  { %p1045_p6 = pnand %p1043_p5, %p1040_p4 }
  0x4a   :  { %1048 = shalt.err (!%p1045_p6)
}
  0x4b   :  { %s1049_s25 = scalar_lea.vmem %s67_s16, 16  ;;  %s1053_s2 = scalar_lea.vmem %s67_s16, 32 }
  0x4c   :  { %p1050_p7 = scmp.ne.s32.totalorder %s67_s16, %s1049_s25  ;;  %p1054_p8 = scmp.lt.s32.totalorder %s67_s16, %s67_s16 }
  0x4d   :  { %p1055_p9 = scmp.lt.s32.totalorder %s1053_s2, %s1049_s25 }
  0x4f   :  { %p1056_p10 = por %p1055_p9, %p1054_p8 }
  0x51   :  { %p1057_p11 = pnand %p1056_p10, %p1050_p7 }
  0x53   :  { %1060 = shalt.err (!%p1057_p11)
}
  0x54   :  { %69 = dma.hbm_to_vmem [thread:$0]  %s1255_s4, 16, %s67_s16, [#allocation11]  }
  0x55   :  { %1083 = dma.done.wait [#allocation5], 1024  }
  0x56   :  { %1084 = vsyncadd [#allocation5], 4294966272 }
  0x57   :  { %1085 = dma.done.wait [#allocation8], 320  }
  0x58   :  { %1086 = vsyncadd [#allocation8], 4294966976 }
  0x59   :  { %1087 = dma.done.wait [#allocation11], 272  }
  0x5a   :  { %1088 = vsyncadd [#allocation11], 4294967024  ;;  %v931_v0 = vld [vmem:[#allocation7] sm:$0xff]   ;;  %v932_v1 = vld [vmem:[#allocation7 + $0x8] sm:$0xff]   ;;  %vm162_vm0 = vcmask 261120   ;;  %vm561_vm1 = vcmask 1043456  }
  0x5b   :  { %842 = vmatprep.subr.bf16.mxu0 %v931_v0  ;;  %v933_v2 = vld [vmem:[#allocation4] sm:$0xff]   ;;  %v934_v3 = vld [vmem:[#allocation4 + $0x8] sm:$0xff]   ;;  %v935_v4 = vld [vmem:[#allocation4 + $0x10] sm:$0xff]   ;;  %vm292_vm2 = vcmask 64512   ;;  %s1098_s4 = smov [#allocation13]  }
  0x5c   :  { %843 = vmatpush3.bf16.msra.mxu0 %v931_v0  ;;  %846 = vmatprep.mubr.msk.bf16.mxu0 %vm162_vm0, %v933_v2  ;;  %v941_v5 = vld [vmem:[#allocation10] sm:$0xff]   ;;  %v942_v6 = vld [vmem:[#allocation10 + $0x8] sm:$0xff]   ;;  %v535_v10 = vld [vmem:[#allocation9] sm:$0xf]  ;;  %s754_s27 = sshll.u32 %s1098_s4, 4  ;;  %s755_s27 = int_to_ptr.vmem [resolvable:$true] %s754_s27 }
  0x5d   :  { %844 = vmatprep.subr.bf16.mxu0 %v932_v1  ;;  %v936_v7 = vld [vmem:[#allocation4 + $0x18] sm:$0xff]   ;;  %900 = vmatprep.subr.bf16.mxu1 %v941_v5  ;;  %v943_v8 = vld [vmem:[#allocation4 + $0x20] sm:$0xff]   ;;  %v944_v11 = vld [vmem:[#allocation4 + $0x28] sm:$0xff]   ;;  %v563_v12 = vsel %vm561_vm1, %v535_v10, 0  ;;  %s1061_s28 = scalar_lea.vmem %s755_s27, 2048  ;;  %p1066_p13 = scmp.lt.s32.totalorder %s755_s27, %s755_s27 }
  0x5e   :  { %v937_v9 = vld [vmem:[#allocation4 + $0x20] sm:$0xff]   ;;  %902 = vmatpush3.bf16.msra.mxu1 %v941_v5  ;;  %874 = vmatprep.mubr.msk.bf16.mxu1 %vm162_vm0, %v943_v8  ;;  %v938_v13 = vld [vmem:[#allocation4 + $0x28] sm:$0xff]   ;;  %v939_v14 = vld [vmem:[#allocation4 + $0x30] sm:$0xff]   ;;  %p1062_p12 = scmp.ne.s32.totalorder %s755_s27, %s1061_s28  ;;  %p1067_p0 = scmp.lt.s32.totalorder %s1061_s28, %s1061_s28 }
  0x5f   :  { %901 = vmatprep.subr.bf16.mxu1 %v942_v6  ;;  %v940_v15 = vld [vmem:[#allocation4 + $0x38] sm:$0xff]   ;;  %v945_v16 = vld [vmem:[#allocation4 + $0x30] sm:$0xff]   ;;  %v947_v18 = vld [vmem:[#allocation4] sm:$0xff]  }
  0x60   :  { %845 = vmatpush3.bf16.msra.mxu0 %v932_v1  ;;  %v946_v17 = vld [vmem:[#allocation4 + $0x38] sm:$0xff]   ;;  %v948_v19 = vld [vmem:[#allocation4 + $0x8] sm:$0xff]   ;;  %v949_v20 = vld [vmem:[#allocation4 + $0x10] sm:$0xff]   ;;  %p1068_p1 = por %p1067_p0, %p1066_p13 }
  0x61   :  { %862 = vmatprep.subr.bf16.mxu0 %v941_v5  ;;  %v950_v21 = vld [vmem:[#allocation4 + $0x18] sm:$0xff]   ;;  %v812_v63 = vld [vmem:[#allocation12] ss:$0 sm:$0xff] }
  0x62   :  { %903 = vmatpush3.bf16.msra.mxu1 %v942_v6  ;;  %p1069_p2 = pnand %p1068_p1, %p1062_p12 }
  0x63   :  { %847 = vmatmul.mubr.msk.bf16.vlgmr.msra.gmra.mrb[0].mxu0 %vm162_vm0, %v934_v3  ;;  %920 = vmatprep.subr.msk.bf16.mxu1 %vm561_vm1, %v535_v10 }
  0x64   :  { %850 = vmatprep.mubr.msk.bf16.mxu0 %vm162_vm0, %v935_v4  ;;  %863 = vmatpush3.bf16.msra.mxu0 %v941_v5 }
  0x65   :  { %864 = vmatprep.subr.bf16.mxu0 %v942_v6  ;;  %875 = vmatmul.mubr.msk.bf16.vlgmr.msra.gmra.mrb[0].mxu1 %vm162_vm0, %v944_v11 }
  0x66   :  { %883 = vmatpush3.bf16.msra.mxu1 %v563_v12  ;;  %878 = vmatprep.mubr.msk.bf16.mxu1 %vm162_vm0, %v945_v16 }
  0x68   :  { %865 = vmatpush3.bf16.msra.mxu0 %v942_v6 }
  0x6b   :  { %851 = vmatmul.mubr.msk.bf16.gmra.mrb[4].mxu0 %vm162_vm0, %v936_v7 }
  0x6c   :  { %854 = vmatprep.mubr.msk.bf16.mxu0 %vm162_vm0, %v937_v9 }
  0x6d   :  { %879 = vmatmul.mubr.msk.bf16.gmra.mrb[4].mxu1 %vm162_vm0, %v946_v17 }
  0x73   :  { %855 = vmatmul.mubr.msk.bf16.gmra.mrb[8].mxu0 %vm162_vm0, %v938_v13 }
  0x74   :  { %858 = vmatprep.mubr.msk.bf16.mxu0 %vm162_vm0, %v939_v14 }
  0x7b   :  { %859 = vmatmul.mubr.msk.bf16.gmra.mrb[12].mxu0 %vm162_vm0, %v940_v15 }
  0x7c   :  { %866 = vmatprep.mubr.msk.bf16.mxu0 %vm162_vm0, %v947_v18 }
  0x83   :  { %867 = vmatmul.mubr.msk.bf16.vlgmr.msra.gmra.mrb[16].mxu0 %vm162_vm0, %v948_v19 }
  0x84   :  { %870 = vmatprep.mubr.msk.bf16.mxu0 %vm162_vm0, %v949_v20 }
  0x8b   :  { %871 = vmatmul.mubr.msk.bf16.gmra.mrb[20].mxu0 %vm162_vm0, %v950_v21 }
 0x136   :  { %v848_v22 = vpop.f32.mrb[0].mxu0 }
 0x137   :  { %v221_v23 = vpop.f32.mrb[1].mxu0 }
 0x138   :  { %v849_v24 = vpop.f32.mrb[2].mxu0 }
 0x139   :  { %v285_v25 = vpack.c.bf16 %v849_v24, %v848_v22  ;;  %v224_v26 = vpop.f32.mrb[3].mxu0 }
 0x13a   :  { %v284_v27 = vpack.c.bf16 %v224_v26, %v221_v23 }
 0x13b   :  { %294 = vst.msk [vmem:[#allocation2 + $0x8] sm:$0xff] %vm292_vm2, %v285_v25 }
 0x13c   :  { %293 = vst.msk [vmem:[#allocation2] sm:$0xff] %vm292_vm2, %v284_v27 }
 0x13e   :  { %v852_v28 = vpop.f32.mrb[4].mxu0 }
 0x13f   :  { %v237_v29 = vpop.f32.mrb[5].mxu0 }
 0x140   :  { %v853_v30 = vpop.f32.mrb[6].mxu0 }
 0x141   :  { %v287_v31 = vpack.c.bf16 %v853_v30, %v852_v28  ;;  %v240_v32 = vpop.f32.mrb[7].mxu0 }
 0x142   :  { %v286_v33 = vpack.c.bf16 %v240_v32, %v237_v29  ;;  %v528_v35 = vld [vmem:[#allocation2 + $0x8] sm:$0xff] }
 0x143   :  { %296 = vst.msk [vmem:[#allocation2 + $0x18] sm:$0xff] %vm292_vm2, %v287_v31  ;;  %v527_v34 = vld [vmem:[#allocation2] sm:$0xff] }
 0x144   :  { %295 = vst.msk [vmem:[#allocation2 + $0x10] sm:$0xff] %vm292_vm2, %v286_v33  ;;  %884 = vmatprep.mubr.msk.bf16.mxu1 %vm292_vm2, %v527_v34 }
 0x145   :  { %885 = vmatmul.mubr.msk.bf16.vlgmr.msra.gmra.mrb[8].mxu1 %vm292_vm2, %v528_v35 }
 0x146   :  { %v856_v36 = vpop.f32.mrb[8].mxu0 }
 0x147   :  { %v253_v37 = vpop.f32.mrb[9].mxu0 }
 0x148   :  { %v857_v38 = vpop.f32.mrb[10].mxu0 }
 0x149   :  { %v289_v39 = vpack.c.bf16 %v857_v38, %v856_v36  ;;  %v256_v40 = vpop.f32.mrb[11].mxu0 }
 0x14a   :  { %v288_v41 = vpack.c.bf16 %v256_v40, %v253_v37  ;;  %v530_v43 = vld [vmem:[#allocation2 + $0x18] sm:$0xff] }
 0x14b   :  { %298 = vst.msk [vmem:[#allocation2 + $0x28] sm:$0xff] %vm292_vm2, %v289_v39  ;;  %v529_v42 = vld [vmem:[#allocation2 + $0x10] sm:$0xff] }
 0x14c   :  { %297 = vst.msk [vmem:[#allocation2 + $0x20] sm:$0xff] %vm292_vm2, %v288_v41  ;;  %888 = vmatprep.mubr.msk.bf16.mxu1 %vm292_vm2, %v529_v42 }
 0x14d   :  { %889 = vmatmul.mubr.msk.bf16.gmra.mrb[12].mxu1 %vm292_vm2, %v530_v43 }
 0x14e   :  { %v860_v44 = vpop.f32.mrb[12].mxu0 }
 0x14f   :  { %v269_v45 = vpop.f32.mrb[13].mxu0 }
 0x150   :  { %v861_v46 = vpop.f32.mrb[14].mxu0 }
 0x151   :  { %v291_v47 = vpack.c.bf16 %v861_v46, %v860_v44  ;;  %v272_v48 = vpop.f32.mrb[15].mxu0 }
 0x152   :  { %v290_v49 = vpack.c.bf16 %v272_v48, %v269_v45  ;;  %v532_v51 = vld [vmem:[#allocation2 + $0x28] sm:$0xff] }
 0x153   :  { %300 = vst.msk [vmem:[#allocation2 + $0x38] sm:$0xff] %vm292_vm2, %v291_v47  ;;  %v531_v50 = vld [vmem:[#allocation2 + $0x20] sm:$0xff] }
 0x154   :  { %299 = vst.msk [vmem:[#allocation2 + $0x30] sm:$0xff] %vm292_vm2, %v290_v49  ;;  %892 = vmatprep.mubr.msk.bf16.mxu1 %vm292_vm2, %v531_v50 }
 0x155   :  { %893 = vmatmul.mubr.msk.bf16.gmra.mrb[0].mxu1 %vm292_vm2, %v532_v51 }
 0x156   :  { %v868_v54 = vpop.f32.mrb[16].mxu0 }
 0x157   :  { %v432_v55 = vpop.f32.mrb[17].mxu0 }
 0x158   :  { %v869_v56 = vpop.f32.mrb[18].mxu0 }
 0x159   :  { %v435_v57 = vpop.f32.mrb[19].mxu0 }
 0x15a   :  { %v534_v53 = vld [vmem:[#allocation2 + $0x38] sm:$0xff] }
 0x15b   :  { %v533_v52 = vld [vmem:[#allocation2 + $0x30] sm:$0xff] }
 0x15c   :  { %896 = vmatprep.mubr.msk.bf16.mxu1 %vm292_vm2, %v533_v52 }
 0x15d   :  { %897 = vmatmul.mubr.msk.bf16.gmra.mrb[4].mxu1 %vm292_vm2, %v534_v53 }
 0x15e   :  { %v872_v58 = vpop.f32.mrb[20].mxu0 }
 0x15f   :  { %v448_v59 = vpop.f32.mrb[21].mxu0 }
 0x160   :  { %v873_v60 = vpop.f32.mrb[22].mxu0 }
 0x161   :  { %v451_v61 = vpop.f32.mrb[23].mxu0 }
 0x218   :  { %v886_v62 = vpop.f32.mrb[8].mxu1 }
 0x219   :  { %v664_v0 = vadd.f32 %v886_v62, %v868_v54  ;;  %v599_v1 = vpop.f32.mrb[9].mxu1 }
 0x21a   :  { %v662_v2 = vadd.f32 %v599_v1, %v432_v55  ;;  %v887_v3 = vpop.f32.mrb[10].mxu1 }
 0x21b   :  { %v719_v4 = vadd.f32 %v812_v63, %v664_v0  ;;  %v665_v5 = vadd.f32 %v887_v3, %v869_v56  ;;  %v602_v6 = vpop.f32.mrb[11].mxu1 }
 0x21c   :  { %v717_v7 = vadd.f32 %v812_v63, %v662_v2  ;;  %v663_v8 = vadd.f32 %v602_v6, %v435_v57 }
 0x21d   :  { %735 = vst [vmem:[#allocation13 + $0x10] sm:$0xff] %v719_v4  ;;  %v720_v9 = vadd.f32 %v812_v63, %v665_v5 }
 0x21e   :  { %733 = vst [vmem:[#allocation13] sm:$0xff] %v717_v7  ;;  %v718_v10 = vadd.f32 %v812_v63, %v663_v8 }
 0x21f   :  { %736 = vst [vmem:[#allocation13 + $0x18] sm:$0xff] %v720_v9 }
 0x220   :  { %734 = vst [vmem:[#allocation13 + $0x8] sm:$0xff] %v718_v10  ;;  %v890_v11 = vpop.f32.mrb[12].mxu1 }
 0x221   :  { %v668_v12 = vadd.f32 %v890_v11, %v872_v58  ;;  %v615_v13 = vpop.f32.mrb[13].mxu1 }
 0x222   :  { %v666_v14 = vadd.f32 %v615_v13, %v448_v59  ;;  %v891_v15 = vpop.f32.mrb[14].mxu1 }
 0x223   :  { %v723_v16 = vadd.f32 %v812_v63, %v668_v12  ;;  %v669_v17 = vadd.f32 %v891_v15, %v873_v60  ;;  %v618_v18 = vpop.f32.mrb[15].mxu1 }
 0x224   :  { %v721_v19 = vadd.f32 %v812_v63, %v666_v14  ;;  %v667_v20 = vadd.f32 %v618_v18, %v451_v61 }
 0x225   :  { %739 = vst [vmem:[#allocation13 + $0x30] sm:$0xff] %v723_v16  ;;  %v724_v21 = vadd.f32 %v812_v63, %v669_v17 }
 0x226   :  { %737 = vst [vmem:[#allocation13 + $0x20] sm:$0xff] %v721_v19  ;;  %v722_v22 = vadd.f32 %v812_v63, %v667_v20 }
 0x227   :  { %740 = vst [vmem:[#allocation13 + $0x38] sm:$0xff] %v724_v21 }
 0x228   :  { %738 = vst [vmem:[#allocation13 + $0x28] sm:$0xff] %v722_v22  ;;  %v894_v23 = vpop.f32.mrb[0].mxu1 }
 0x229   :  { %v727_v24 = vadd.f32 %v894_v23, %v812_v63  ;;  %v631_v25 = vpop.f32.mrb[1].mxu1 }
 0x22a   :  { %v725_v26 = vadd.f32 %v812_v63, %v631_v25  ;;  %v895_v27 = vpop.f32.mrb[2].mxu1 }
 0x22b   :  { %743 = vst [vmem:[#allocation13 + $0x50] sm:$0xff] %v727_v24  ;;  %v728_v28 = vadd.f32 %v895_v27, %v812_v63  ;;  %v634_v29 = vpop.f32.mrb[3].mxu1 }
 0x22c   :  { %741 = vst [vmem:[#allocation13 + $0x40] sm:$0xff] %v725_v26  ;;  %v726_v30 = vadd.f32 %v812_v63, %v634_v29 }
 0x22d   :  { %744 = vst [vmem:[#allocation13 + $0x58] sm:$0xff] %v728_v28 }
 0x22e   :  { %742 = vst [vmem:[#allocation13 + $0x48] sm:$0xff] %v726_v30 }
 0x230   :  { %v898_v31 = vpop.f32.mrb[4].mxu1 }
 0x231   :  { %v731_v32 = vadd.f32 %v898_v31, %v812_v63  ;;  %v647_v33 = vpop.f32.mrb[5].mxu1 }
 0x232   :  { %v729_v34 = vadd.f32 %v812_v63, %v647_v33  ;;  %v899_v35 = vpop.f32.mrb[6].mxu1 }
 0x233   :  { %747 = vst [vmem:[#allocation13 + $0x70] sm:$0xff] %v731_v32  ;;  %v732_v36 = vadd.f32 %v899_v35, %v812_v63  ;;  %v650_v37 = vpop.f32.mrb[7].mxu1 }
 0x234   :  { %745 = vst [vmem:[#allocation13 + $0x60] sm:$0xff] %v729_v34  ;;  %v730_v38 = vadd.f32 %v812_v63, %v650_v37 }
 0x235   :  { %748 = vst [vmem:[#allocation13 + $0x78] sm:$0xff] %v732_v36 }
 0x236   :  { %746 = vst [vmem:[#allocation13 + $0x68] sm:$0xff] %v730_v38 }
 0x237   :  { %1072 = shalt.err (!%p1069_p2)
}
 0x238   :  { %s1073_s21 = scalar_lea.hbm %s1256_s5, 2048 }
 0x239   :  { %p1074_p3 = scmp.ne.s32.totalorder %s1256_s5, %s1073_s21  ;;  %p1077_p4 = scmp.lt.u32.totalorder %s1073_s21, %s1256_s5 }
 0x23b   :  { %p1079_p5 = pnand %p1077_p4, %p1074_p3 }
 0x23d   :  { %1082 = shalt.err (!%p1079_p5)
}
 0x23e   :  { %s1099_s11 = smov 128   ;;  %s1100_s12 = smov 8  }
 0x23f   :  { %760 = dma.vmem_to_hbm [thread:$0]  %s755_s27, 2048, %s1256_s5, [#allocation6], %s1099_s11, %s1099_s11, %s1100_s12  }
 0x240   :  { %1089 = dma.done.wait [#allocation6], 2048  }
 0x241   :  { %1090 = vsyncadd [#allocation6], 4294965248 }
 0x242   :  { %764 = vsyncpa [#allocation5], 1 }
 0x243   :  { %765 = vsyncpa [#allocation8], 1 }
 0x244   :  { %766 = vsyncpa [#allocation11], 1 }
 0x245   :  { %767 = vsyncpa [#allocation6], 1 }

</bundles_post_ra>
